<compile_context>
chip_gen: v6e
topology: v6e:2x2x1
jax: 0.10.0
libtpu: 0.0.40
codegen_flags: <defaults>
</compile_context>

<pallas_src>
import functools

import jax
import jax.numpy as jnp
from jax import lax
from jax.experimental import pallas as pl
from jax.experimental.pallas import tpu as pltpu


def _sublane_granularity(dtype) -> int:
    itemsize = jnp.dtype(dtype).itemsize
    return {4: 8, 2: 16, 1: 32}.get(itemsize, 8)


def _pick_row_tile(n_rows, lane_elems, itemsize, gran):
    """Largest row tile that divides n_rows, is a multiple of `gran`, keeps a
    per-input block around <= 1 MiB, and (if possible) leaves a grid >= 2."""
    cap = min(512, max(gran, (1 << 20) // max(1, lane_elems * itemsize)))
    divisors = [d for d in range(gran, min(n_rows, cap) + 1, gran)
                if n_rows % d == 0]
    if not divisors:
        return n_rows                       # full-extent block (always legal)
    multi = [d for d in divisors if n_rows // d >= 2]
    return max(multi) if multi else max(divisors)


def _basic_loss_c_kernel(im_ref, den_ref, msk_ref, tgt_ref, out_ref,
                         acc1_ref, acc2_ref, sel_ref, *, n_full, n_red):
    L = den_ref.shape[1]                    # 2*W  (row pair on the lane axis)
    W = L // 2
    Wo = W // 2
    step = pl.program_id(1)
    last = pl.num_programs(1) - 1
    f32 = jnp.float32

    @pl.when(step == 0)
    def _init():
        acc1_ref[...] = jnp.zeros_like(acc1_ref)
        acc2_ref[...] = jnp.zeros_like(acc2_ref)
        # Selection matrix S: column j < Wo picks source lane 2j (even lanes),
        # column j >= Wo picks source lane 2(j-Wo)+1 (odd lanes).
        w_idx = lax.broadcasted_iota(jnp.int32, (W, 2 * Wo), 0)
        j_idx = lax.broadcasted_iota(jnp.int32, (W, 2 * Wo), 1)
        src = jnp.where(j_idx < Wo, 2 * j_idx, 2 * (j_idx - Wo) + 1)
        sel_ref[...] = jnp.where(w_idx == src, 1.0, 0.0).astype(sel_ref.dtype)

    im = im_ref[...].astype(f32)
    den = den_ref[...].astype(f32)
    msk = msk_ref[...].astype(f32)
    tgt = tgt_ref[...].astype(f32)

    # ---- mean((im_noisy - denoise_red_c)**2): pure VPU accumulation ---------
    d1 = im - den
    acc1_ref[...] += d1 * d1

    # ---- 2x2 / stride-2 max pool of denoise_red_c * mask_red ----------------
    prod = den * msk                                   # (rt, 2W)
    vmax = jnp.maximum(prod[:, :W], prod[:, W:])       # vertical max, (rt, W)

    # Even/odd lane compaction on the idle MXU (exact bf16x3 split of vmax).
    c0 = vmax.astype(jnp.bfloat16)
    r1 = vmax - c0.astype(f32)
    c1 = r1.astype(jnp.bfloat16)
    r2 = r1 - c1.astype(f32)
    c2 = r2.astype(jnp.bfloat16)
    s = sel_ref[...]
    gath = (jnp.dot(c0, s, preferred_element_type=f32)
            + jnp.dot(c1, s, preferred_element_type=f32)
            + jnp.dot(c2, s, preferred_element_type=f32))   # (rt, 2*Wo)
    pooled = jnp.maximum(gath[:, :Wo], gath[:, Wo:])         # horizontal max

    # ---- mean((input_red - pooled)**2): pure VPU accumulation ---------------
    d2 = tgt - pooled
    acc2_ref[...] += d2 * d2

    # ---- single XLU collapse + hoisted scalar divides, last step only -------
    @pl.when(step == last)
    def _finalize():
        s1 = jnp.sum(acc1_ref[...], keepdims=True)           # (1, 1)
        s2 = jnp.sum(acc2_ref[...], keepdims=True)           # (1, 1)
        total = s1 * (1.0 / n_full) + s2 * (1.0 / n_red)
        out_ref[...] = total.reshape(1, 1, 1)


def basic_loss_c(im_noisy, input_red, denoise_red_c, mask_red):
    """Pallas implementation of BasicLoss_c.forward. Inputs are NCHW."""
    N, C, H, W = im_noisy.shape
    assert H % 2 == 0 and W % 2 == 0, "2x2/stride-2 pooling needs even H, W"
    Ho, Wo = H // 2, W // 2
    R2 = N * C * Ho                  # one vertical row-pair per row
    L = 2 * W

    # Free, contiguous reshapes only (no transposes, no dtype copies).
    im2 = im_noisy.reshape(R2, L)
    den2 = denoise_red_c.reshape(R2, L)
    msk2 = mask_red.reshape(R2, L)
    tgt2 = input_red.reshape(R2, Wo)

    gran = max(_sublane_granularity(x.dtype) for x in (im2, den2, msk2, tgt2))
    max_item = max(jnp.dtype(x.dtype).itemsize for x in (im2, den2, msk2))
    rt = _pick_row_tile(R2, L, max_item, gran)
    steps = R2 // rt
    ncores = 2 if (steps % 2 == 0 and steps >= 2) else 1   # v7x megacore split
    spc = steps // ncores                                  # steps per core

    n_full = float(N * C * H * W)
    n_red = float(N * C * Ho * Wo)

    kernel = functools.partial(_basic_loss_c_kernel, n_full=n_full, n_red=n_red)

    def row_map(p, i):
        return (p * spc + i, 0)

    bytes_accessed = int(
        (im2.size + den2.size + msk2.size) * jnp.dtype(im2.dtype).itemsize
        + tgt2.size * jnp.dtype(tgt2.dtype).itemsize + ncores * 4)
    flops = int(10 * N * C * H * W + 12 * R2 * W * Wo)

    out = pl.pallas_call(
        kernel,
        out_shape=jax.ShapeDtypeStruct((ncores, 1, 1), jnp.float32),
        grid_spec=pltpu.PrefetchScalarGridSpec(
            num_scalar_prefetch=0,
            grid=(ncores, spc),
            in_specs=[
                pl.BlockSpec((rt, L), row_map),    # im_noisy (row-pair layout)
                pl.BlockSpec((rt, L), row_map),    # denoise_red_c
                pl.BlockSpec((rt, L), row_map),    # mask_red
                pl.BlockSpec((rt, Wo), row_map),   # input_red
            ],
            out_specs=pl.BlockSpec((1, 1, 1), lambda p, i: (p, 0, 0)),
            scratch_shapes=[
                pltpu.VMEM((rt, L), jnp.float32),        # acc: mse_red_all
                pltpu.VMEM((rt, Wo), jnp.float32),       # acc: mse_red
                pltpu.VMEM((W, 2 * Wo), jnp.bfloat16),   # lane-selection matrix
            ],
        ),
        compiler_params=pltpu.CompilerParams(
            dimension_semantics=("parallel", "arbitrary")),
        cost_estimate=pl.CostEstimate(
            flops=flops, transcendentals=0, bytes_accessed=bytes_accessed),
    )(im2, den2, msk2, tgt2)

    return jnp.sum(out)   # sum per-core partial losses -> scalar


def _reference(im_noisy, input_red, denoise_red_c, mask_red):
    """Pure-JAX reference mirroring the PyTorch forward."""
    mse_red_all = (im_noisy - denoise_red_c) ** 2
    masked = denoise_red_c * mask_red
    N, C, H, W = masked.shape
    pooled = jnp.max(
        masked.reshape(N, C, H // 2, 2, W // 2, 2), axis=(3, 5)
    )
    mse_red = (input_red - pooled) ** 2
    return jnp.mean(mse_red_all) + jnp.mean(mse_red)


if __name__ == "__main__":
    key = jax.random.PRNGKey(0)
    k1, k2, k3, k4 = jax.random.split(key, 4)

    N, C, H, W = 2, 4, 16, 16
    im_noisy = jax.random.normal(k1, (N, C, H, W), dtype=jnp.float32)
    denoise_red_c = jax.random.normal(k2, (N, C, H, W), dtype=jnp.float32)
    mask_red = (jax.random.uniform(k3, (N, C, H, W)) > 0.5).astype(jnp.float32)
    input_red = jax.random.normal(k4, (N, C, H // 2, W // 2), dtype=jnp.float32)

    loss = basic_loss_c(im_noisy, input_red, denoise_red_c, mask_red)
    loss = jax.block_until_ready(loss)

    ref = _reference(im_noisy, input_red, denoise_red_c, mask_red)
    assert jnp.allclose(loss, ref, rtol=1e-5, atol=1e-5), (loss, ref)

    print("KERNEL_OK")
</pallas_src>

<mosaic_0001>
module attributes {stable_mosaic.version = 11 : i64} {
  func.func @_basic_loss_c_kernel(%arg0: i32, %arg1: i32, %arg2: memref<32x32xf32, #tpu.memory_space<vmem>>, %arg3: memref<32x32xf32, #tpu.memory_space<vmem>>, %arg4: memref<32x32xf32, #tpu.memory_space<vmem>>, %arg5: memref<32x8xf32, #tpu.memory_space<vmem>>, %arg6: memref<1x1x1xf32, #tpu.memory_space<vmem>>, %arg7: memref<32x32xf32, #tpu.memory_space<vmem>>, %arg8: memref<32x8xf32, #tpu.memory_space<vmem>>, %arg9: memref<16x16xbf16, #tpu.memory_space<vmem>>) attributes {dimension_semantics = [#tpu.dimension_semantics<parallel>, #tpu.dimension_semantics<arbitrary>], iteration_bounds = array<i64: 2, 1>, scalar_prefetch = 0 : i64, scratch_operands = 3 : i64, tpu.core_type = #tpu.core_type<tc>, window_params = [{transform_indices = @transform_0, window_bounds = array<i64: 32, 32>}, {transform_indices = @transform_1, window_bounds = array<i64: 32, 32>}, {transform_indices = @transform_2, window_bounds = array<i64: 32, 32>}, {transform_indices = @transform_3, window_bounds = array<i64: 32, 8>}, {transform_indices = @transform_4, window_bounds = array<i64: 1, 1, 1>}]} {
    %c0_i32 = arith.constant 0 : i32
    %0 = arith.cmpi eq, %arg1, %c0_i32 : i32
    %1 = arith.extui %0 : i1 to i32
    %c0_i32_0 = arith.constant 0 : i32
    %2 = arith.cmpi ne, %1, %c0_i32_0 : i32
    scf.if %2 {
      %cst_22 = arith.constant 0.000000e+00 : f32
      %40 = vector.broadcast %cst_22 : f32 to vector<32x32xf32>
      %c0_23 = arith.constant 0 : index
      %c0_24 = arith.constant 0 : index
      %41 = vector.load %arg7[%c0_23, %c0_24] : memref<32x32xf32, #tpu.memory_space<vmem>>, vector<32x32xf32>
      tpu.vector_store %arg7[%c0_23, %c0_24], %40 {strides = array<i32>} : memref<32x32xf32, #tpu.memory_space<vmem>>, vector<32x32xf32>,
      %cst_25 = arith.constant 0.000000e+00 : f32
      %42 = vector.broadcast %cst_25 : f32 to vector<32x8xf32>
      %c0_26 = arith.constant 0 : index
      %c0_27 = arith.constant 0 : index
      %43 = vector.load %arg8[%c0_26, %c0_27] : memref<32x8xf32, #tpu.memory_space<vmem>>, vector<32x8xf32>
      tpu.vector_store %arg8[%c0_26, %c0_27], %42 {strides = array<i32>} : memref<32x8xf32, #tpu.memory_space<vmem>>, vector<32x8xf32>,
      %44 = tpu.iota {dimensions = array<i32: 0>} : vector<16x16xi32>
      %45 = tpu.iota {dimensions = array<i32: 1>} : vector<16x16xi32>
      %c8_i32 = arith.constant 8 : i32
      %46 = vector.broadcast %c8_i32 : i32 to vector<16x16xi32>
      %47 = arith.cmpi slt, %45, %46 : vector<16x16xi32>
      %c2_i32 = arith.constant 2 : i32
      %48 = vector.broadcast %c2_i32 : i32 to vector<16x16xi32>
      %49 = arith.muli %48, %45 : vector<16x16xi32>
      %c8_i32_28 = arith.constant 8 : i32
      %50 = vector.broadcast %c8_i32_28 : i32 to vector<16x16xi32>
      %51 = arith.subi %45, %50 : vector<16x16xi32>
      %c2_i32_29 = arith.constant 2 : i32
      %52 = vector.broadcast %c2_i32_29 : i32 to vector<16x16xi32>
      %53 = arith.muli %52, %51 : vector<16x16xi32>
      %c1_i32 = arith.constant 1 : i32
      %54 = vector.broadcast %c1_i32 : i32 to vector<16x16xi32>
      %55 = arith.addi %53, %54 : vector<16x16xi32>
      %56 = arith.select %47, %49, %55 : vector<16x16xi1>, vector<16x16xi32>
      %57 = arith.cmpi eq, %44, %56 : vector<16x16xi32>
      %cst_30 = arith.constant 1.000000e+00 : f32
      %cst_31 = arith.constant 0.000000e+00 : f32
      %58 = vector.broadcast %cst_30 : f32 to vector<16x16xf32>
      %59 = vector.broadcast %cst_31 : f32 to vector<16x16xf32>
      %60 = arith.select %57, %58, %59 : vector<16x16xi1>, vector<16x16xf32>
      %61 = arith.truncf %60 : vector<16x16xf32> to vector<16x16xbf16>
      %c0_32 = arith.constant 0 : index
      %c0_33 = arith.constant 0 : index
      %62 = vector.load %arg9[%c0_32, %c0_33] : memref<16x16xbf16, #tpu.memory_space<vmem>>, vector<16x16xbf16>
      tpu.vector_store %arg9[%c0_32, %c0_33], %61 {strides = array<i32>} : memref<16x16xbf16, #tpu.memory_space<vmem>>, vector<16x16xbf16>,
    } else {
    }
    %c0 = arith.constant 0 : index
    %c0_1 = arith.constant 0 : index
    %3 = vector.load %arg2[%c0, %c0_1] : memref<32x32xf32, #tpu.memory_space<vmem>>, vector<32x32xf32>
    %c0_2 = arith.constant 0 : index
    %c0_3 = arith.constant 0 : index
    %4 = vector.load %arg3[%c0_2, %c0_3] : memref<32x32xf32, #tpu.memory_space<vmem>>, vector<32x32xf32>
    %c0_4 = arith.constant 0 : index
    %c0_5 = arith.constant 0 : index
    %5 = vector.load %arg4[%c0_4, %c0_5] : memref<32x32xf32, #tpu.memory_space<vmem>>, vector<32x32xf32>
    %c0_6 = arith.constant 0 : index
    %c0_7 = arith.constant 0 : index
    %6 = vector.load %arg5[%c0_6, %c0_7] : memref<32x8xf32, #tpu.memory_space<vmem>>, vector<32x8xf32>
    %7 = arith.subf %3, %4 : vector<32x32xf32>
    %c0_8 = arith.constant 0 : index
    %c0_9 = arith.constant 0 : index
    %8 = vector.load %arg7[%c0_8, %c0_9] : memref<32x32xf32, #tpu.memory_space<vmem>>, vector<32x32xf32>
    %9 = arith.mulf %7, %7 : vector<32x32xf32>
    %10 = arith.addf %8, %9 : vector<32x32xf32>
    %c0_10 = arith.constant 0 : index
    %c0_11 = arith.constant 0 : index
    %11 = vector.load %arg7[%c0_10, %c0_11] : memref<32x32xf32, #tpu.memory_space<vmem>>, vector<32x32xf32>
    tpu.vector_store %arg7[%c0_10, %c0_11], %10 {strides = array<i32>} : memref<32x32xf32, #tpu.memory_space<vmem>>, vector<32x32xf32>,
    %12 = arith.mulf %4, %5 : vector<32x32xf32>
    %13 = vector.extract_strided_slice %12 {offsets = [0, 0], sizes = [32, 16], strides = [1, 1]} : vector<32x32xf32> to vector<32x16xf32>
    %14 = vector.extract_strided_slice %12 {offsets = [0, 16], sizes = [32, 16], strides = [1, 1]} : vector<32x32xf32> to vector<32x16xf32>
    %15 = arith.maximumf %13, %14 : vector<32x16xf32>
    %16 = arith.truncf %15 : vector<32x16xf32> to vector<32x16xbf16>
    %17 = arith.extf %16 : vector<32x16xbf16> to vector<32x16xf32>
    %18 = arith.subf %15, %17 : vector<32x16xf32>
    %19 = arith.truncf %18 : vector<32x16xf32> to vector<32x16xbf16>
    %20 = arith.extf %19 : vector<32x16xbf16> to vector<32x16xf32>
    %21 = arith.subf %18, %20 : vector<32x16xf32>
    %22 = arith.truncf %21 : vector<32x16xf32> to vector<32x16xbf16>
    %c0_12 = arith.constant 0 : index
    %c0_13 = arith.constant 0 : index
    %23 = vector.load %arg9[%c0_12, %c0_13] : memref<16x16xbf16, #tpu.memory_space<vmem>>, vector<16x16xbf16>
    %cst = arith.constant dense<0.000000e+00> : vector<32x16xf32>
    %24 = tpu.matmul %16, %23, %cst {dimension_numbers = #tpu.dot_dimension_numbers<[1], [0], [0], [1], [0, 0, 1, 1], [], []>} : vector<32x16xbf16>, vector<16x16xbf16>, vector<32x16xf32> -> vector<32x16xf32>
    %cst_14 = arith.constant dense<0.000000e+00> : vector<32x16xf32>
    %25 = tpu.matmul %19, %23, %cst_14 {dimension_numbers = #tpu.dot_dimension_numbers<[1], [0], [0], [1], [0, 0, 1, 1], [], []>} : vector<32x16xbf16>, vector<16x16xbf16>, vector<32x16xf32> -> vector<32x16xf32>
    %26 = arith.addf %24, %25 : vector<32x16xf32>
    %cst_15 = arith.constant dense<0.000000e+00> : vector<32x16xf32>
    %27 = tpu.matmul %22, %23, %cst_15 {dimension_numbers = #tpu.dot_dimension_numbers<[1], [0], [0], [1], [0, 0, 1, 1], [], []>} : vector<32x16xbf16>, vector<16x16xbf16>, vector<32x16xf32> -> vector<32x16xf32>
    %28 = arith.addf %26, %27 : vector<32x16xf32>
    %29 = vector.extract_strided_slice %28 {offsets = [0, 0], sizes = [32, 8], strides = [1, 1]} : vector<32x16xf32> to vector<32x8xf32>
    %30 = vector.extract_strided_slice %28 {offsets = [0, 8], sizes = [32, 8], strides = [1, 1]} : vector<32x16xf32> to vector<32x8xf32>
    %31 = arith.maximumf %29, %30 : vector<32x8xf32>
    %32 = arith.subf %6, %31 : vector<32x8xf32>
    %c0_16 = arith.constant 0 : index
    %c0_17 = arith.constant 0 : index
    %33 = vector.load %arg8[%c0_16, %c0_17] : memref<32x8xf32, #tpu.memory_space<vmem>>, vector<32x8xf32>
    %34 = arith.mulf %32, %32 : vector<32x8xf32>
    %35 = arith.addf %33, %34 : vector<32x8xf32>
    %c0_18 = arith.constant 0 : index
    %c0_19 = arith.constant 0 : index
    %36 = vector.load %arg8[%c0_18, %c0_19] : memref<32x8xf32, #tpu.memory_space<vmem>>, vector<32x8xf32>
    tpu.vector_store %arg8[%c0_18, %c0_19], %35 {strides = array<i32>} : memref<32x8xf32, #tpu.memory_space<vmem>>, vector<32x8xf32>,
    %c0_i32_20 = arith.constant 0 : i32
    %37 = arith.cmpi eq, %arg1, %c0_i32_20 : i32
    %38 = arith.extui %37 : i1 to i32
    %c0_i32_21 = arith.constant 0 : i32
    %39 = arith.cmpi ne, %38, %c0_i32_21 : i32
    scf.if %39 {
      %c0_22 = arith.constant 0 : index
      %c0_23 = arith.constant 0 : index
      %40 = vector.load %arg7[%c0_22, %c0_23] : memref<32x32xf32, #tpu.memory_space<vmem>>, vector<32x32xf32>
      %41 = vector.shape_cast %40 : vector<32x32xf32> to vector<1x32x32xf32>
      %cst_24 = arith.constant dense<0.000000e+00> : vector<1xf32>
      %42 = vector.multi_reduction <add>, %41, %cst_24 [1, 2] : vector<1x32x32xf32> to vector<1xf32>
      %43 = vector.shape_cast %42 : vector<1xf32> to vector<1x1x1xf32>
      %44 = vector.extract %43[0, 0, 0] : f32 from vector<1x1x1xf32>
      %45 = vector.broadcast %44 : f32 to vector<1x1xf32>
      %c0_25 = arith.constant 0 : index
      %c0_26 = arith.constant 0 : index
      %46 = vector.load %arg8[%c0_25, %c0_26] : memref<32x8xf32, #tpu.memory_space<vmem>>, vector<32x8xf32>
      %47 = vector.shape_cast %46 : vector<32x8xf32> to vector<1x32x8xf32>
      %cst_27 = arith.constant dense<0.000000e+00> : vector<1xf32>
      %48 = vector.multi_reduction <add>, %47, %cst_27 [1, 2] : vector<1x32x8xf32> to vector<1xf32>
      %49 = vector.shape_cast %48 : vector<1xf32> to vector<1x1x1xf32>
      %50 = vector.extract %49[0, 0, 0] : f32 from vector<1x1x1xf32>
      %51 = vector.broadcast %50 : f32 to vector<1x1xf32>
      %cst_28 = arith.constant 4.8828125E-4 : f32
      %52 = vector.broadcast %cst_28 : f32 to vector<1x1xf32>
      %53 = arith.mulf %45, %52 : vector<1x1xf32>
      %cst_29 = arith.constant 0.001953125 : f32
      %54 = vector.broadcast %cst_29 : f32 to vector<1x1xf32>
      %55 = arith.mulf %51, %54 : vector<1x1xf32>
      %56 = arith.addf %53, %55 : vector<1x1xf32>
      %57 = vector.shape_cast %56 : vector<1x1xf32> to vector<1x1x1xf32>
      %c0_30 = arith.constant 0 : index
      %c0_31 = arith.constant 0 : index
      %c0_32 = arith.constant 0 : index
      %58 = vector.load %arg6[%c0_30, %c0_31, %c0_32] : memref<1x1x1xf32, #tpu.memory_space<vmem>>, vector<1x1x1xf32>
      tpu.vector_store %arg6[%c0_30, %c0_31, %c0_32], %57 {strides = array<i32>} : memref<1x1x1xf32, #tpu.memory_space<vmem>>, vector<1x1x1xf32>,
    } else {
    }
    return
  }
  func.func @transform_0(%arg0: i32, %arg1: i32) -> (i32, i32) {
    %c1_i32 = arith.constant 1 : i32
    %0 = arith.muli %arg0, %c1_i32 : i32
    %1 = arith.addi %0, %arg1 : i32
    %c0_i32 = arith.constant 0 : i32
    %c0_i32_0 = arith.constant 0 : i32
    return %1, %c0_i32 : i32, i32
  }
  func.func @transform_1(%arg0: i32, %arg1: i32) -> (i32, i32) {
    %c1_i32 = arith.constant 1 : i32
    %0 = arith.muli %arg0, %c1_i32 : i32
    %1 = arith.addi %0, %arg1 : i32
    %c0_i32 = arith.constant 0 : i32
    %c0_i32_0 = arith.constant 0 : i32
    return %1, %c0_i32 : i32, i32
  }
  func.func @transform_2(%arg0: i32, %arg1: i32) -> (i32, i32) {
    %c1_i32 = arith.constant 1 : i32
    %0 = arith.muli %arg0, %c1_i32 : i32
    %1 = arith.addi %0, %arg1 : i32
    %c0_i32 = arith.constant 0 : i32
    %c0_i32_0 = arith.constant 0 : i32
    return %1, %c0_i32 : i32, i32
  }
  func.func @transform_3(%arg0: i32, %arg1: i32) -> (i32, i32) {
    %c1_i32 = arith.constant 1 : i32
    %0 = arith.muli %arg0, %c1_i32 : i32
    %1 = arith.addi %0, %arg1 : i32
    %c0_i32 = arith.constant 0 : i32
    %c0_i32_0 = arith.constant 0 : i32
    return %1, %c0_i32 : i32, i32
  }
  func.func @transform_4(%arg0: i32, %arg1: i32) -> (i32, i32, i32) {
    %c0_i32 = arith.constant 0 : i32
    %c0_i32_0 = arith.constant 0 : i32
    %c0_i32_1 = arith.constant 0 : i32
    return %arg0, %c0_i32, %c0_i32_0 : i32, i32, i32
  }
}

</mosaic_0001>

<bundles_post_ra>
// kernel: tpu_custom_call.1
= control target key start
LH: loop header
LB: loop body
LE: loop exit
PB: predicated region body
PF: predicated region fallthrough
CT: control target
= control target key end

     0   :  { %s924_s15 = smov 0   ;;  %s926_s16 = smov 0   ;;  %s1042_s0 = inlined_call_operand.vmem [shape: f32[64,32], index: 0, kind: input, shape index: {}]   ;;  %s1043_s1 = inlined_call_operand.vmem [shape: f32[64,32], index: 1, kind: input, shape index: {}]   ;;  %s1044_s2 = inlined_call_operand.vmem [shape: f32[64,32], index: 2, kind: input, shape index: {}]   ;;  %s1045_s3 = inlined_call_operand.vmem [shape: f32[64,8], index: 3, kind: input, shape index: {}]   ;;  %s1046_s4 = inlined_call_operand.vmem [shape: f32[2,1,1], index: 4, kind: output, shape index: {}]  }
   0x1   :  { %s928_s17 = smov 0  }
   0x2 LB: > { %s26_s18 = sadd.s32 1, %s890_s16  ;;  %p790_p0 = scmp.ge.s32.totalorder %s894_s17, 1  ;;  %s894_s17 = sphi %s928_s17, %s14_s17   ;;  %s890_s16 = sphi %s926_s16, %s1048_s16   ;;  %s886_s15 = sphi %s924_s15, %s1047_s15  }
   0x3   : > { %p28_p1 = scmp.ge.s32.totalorder %s26_s18, 2  ;;  %p224_p2 = scmp.lt.s32.totalorder %s894_s17, 3 }
   0x5   : > { %s1050_s18 = smov (%p28_p1, %s26_s18), 0  ;;  %p225_p3 = pnand %p790_p0, %p224_p2 }
   0x6   : > { %s791_s19 = sshll.u32 (!%p225_p3), %s886_s15, 2  ;;  %s897_s30 = smov (!%p225_p3), 112  }
   0x7   : > { %228 = sbr.rel (%p225_p3) target bundleno = 702 (0x2be), region = 36  ;;  %p269_p4 = scmp.lt.s32.totalorder (!%p225_p3), %s791_s19, 7 }
   0x8   : > { %s898_s5 = smov (!%p225_p3), 120   ;;  %p299_p5 = scmp.lt.s32.totalorder (!%p225_p3), %s886_s15, 1 }
   0xc   : > { %vm307_vm0 = vcmask 261120   ;;  %v317_v0 = vlaneseq  ;;  %v896_v1 = vmov 0.0   ;;  %s1052_s19 = smov (!%p269_p4, %s791_s19), 7  ;;  %vm340_vm2 = vcmask 125952   ;;  %s1054_s15 = smov (!%p299_p5, %s886_s15), 1 }
   0xd   : > { %310 = vst.msk [vmem:[#allocation2 + $0x10] sm:$0xff] %vm307_vm0, %v896_v1  ;;  %308 = vst.msk [vmem:[#allocation2] sm:$0xff] %vm307_vm0, %v896_v1  ;;  %s953_s20 = sshll.u32 %s1052_s19, 3  ;;  %vm434_vm5 = vcmask 130048   ;;  %vm312_vm6 = vcmask 64512   ;;  %s301_s13 = scalar_lea.vmem %s1046_s4, %s1054_s15  ;;  %vm693_vm7 = vcmask 0  }
   0xe   : > { %309 = vst.msk [vmem:[#allocation2 + $0x8] sm:$0xff] %vm307_vm0, %v896_v1  ;;  %311 = vst.msk [vmem:[#allocation2 + $0x18] sm:$0xff] %vm307_vm0, %v896_v1  ;;  %v321_v2 = vand.u32 127, %v317_v0  ;;  %v318_v3 = vshrl.u32 %v317_v0, 7  ;;  %s959_s23 = scalar_lea.vmem %s1043_s1, %s953_s20  ;;  %s965_s26 = scalar_lea.vmem %s1044_s2, %s953_s20 }
   0xf   : > { %v349_v7 = vld [vmem:[%s959_s23 + $0x10] sm:$0xff]  ;;  %s973_s29 = scalar_lea.vmem %s1042_s0, %s953_s20  ;;  %v347_v9 = vld [vmem:[%s959_s23] sm:$0xff]  ;;  %v350_v18 = vld [vmem:[%s959_s23 + $0x18] sm:$0xff]  ;;  %313 = vst.msk [vmem:[#allocation3] sm:$0xff] %vm312_vm6, %v896_v1  ;;  %s296_s8 = scalar_lea.vmem %s1045_s3, %s953_s20 }
  0x10   : > { %v799_v4 = vadd.s32 4294967288, %v321_v2  ;;  %v323_v5 = vmul.u32 2, %v321_v2  ;;  %v353_v8 = vld [vmem:[%s965_s26 + $0x10] sm:$0xff]  ;;  %vm322_vm1 = vcmp.lt.s32.totalorder %v321_v2, 8  ;;  %v351_v12 = vld [vmem:[%s965_s26] sm:$0xff]  ;;  %v319_v13 = vadd.s32 8, %v318_v3 }
  0x11   : > { %v382_v10 = vmul.f32 %v353_v8, %v349_v7  ;;  %v345_v11 = vld [vmem:[%s973_s29 + $0x10] sm:$0xff]  ;;  %v380_v16 = vmul.f32 %v351_v12, %v347_v9  ;;  %v343_v17 = vld [vmem:[%s973_s29] sm:$0xff]  ;;  %v354_v21 = vld [vmem:[%s965_s26 + $0x18] sm:$0xff]  ;;  %314 = vst.msk [vmem:[#allocation3 + $0x8] sm:$0xff] %vm312_vm6, %v896_v1 }
  0x12   : > { %v325_v6 = vmul.u32 2, %v799_v4  ;;  %v361_v15 = vsub.f32 %v345_v11, %v349_v7  ;;  %v359_v20 = vsub.f32 %v343_v17, %v347_v9  ;;  %v346_v22 = vld [vmem:[%s973_s29 + $0x18] sm:$0xff]  ;;  %v383_v26 = vmul.f32 %v354_v21, %v350_v18  ;;  %v348_v28 = vld [vmem:[%s959_s23 + $0x8] sm:$0xff]  ;;  %315 = vst.msk [vmem:[#allocation3 + $0x10] sm:$0xff] %vm312_vm6, %v896_v1  ;;  %316 = vst.msk [vmem:[#allocation3 + $0x18] sm:$0xff] %vm312_vm6, %v896_v1 }
  0x13   : > { %392 = vrot.lane.b32.xlu1 %v382_v10, %s897_s30  ;;  %388 = vrot.lane.b32.xlu0 %v380_v16, %s897_s30  ;;  %v362_v27 = vsub.f32 %v346_v22, %v350_v18  ;;  %v352_v29 = vld [vmem:[%s965_s26 + $0x8] sm:$0xff] }
  0x14   : > { %v326_v14 = vadd.s32 1, %v325_v6  ;;  %v365_v19 = vld [vmem:[#allocation2 + $0x10] sm:$0xff]  ;;  %v369_v24 = vmul.f32 %v361_v15, %v361_v15  ;;  %v363_v25 = vld [vmem:[#allocation2] sm:$0xff]  ;;  %v367_v30 = vmul.f32 %v359_v20, %v359_v20  ;;  %v381_v32 = vmul.f32 %v352_v29, %v348_v28  ;;  %v344_v33 = vld [vmem:[%s973_s29 + $0x8] sm:$0xff] }
  0x15   : > { %v366_v31 = vld [vmem:[#allocation2 + $0x18] sm:$0xff]  ;;  %v370_v36 = vmul.f32 %v362_v27, %v362_v27  ;;  %v360_v37 = vsub.f32 %v344_v33, %v348_v28  ;;  %v364_v40 = vld [vmem:[#allocation2 + $0x8] sm:$0xff] }
  0x16   : > { %v327_v23 = vsel %vm322_vm1, %v323_v5, %v326_v14  ;;  %v373_v35 = vadd.f32 %v369_v24, %v365_v19  ;;  %v371_v39 = vadd.f32 %v367_v30, %v363_v25 }
  0x17   : > { %vm328_vm3 = vcmp.eq.s32.totalorder %v318_v3, %v327_v23  ;;  %vm329_vm4 = vcmp.eq.s32.totalorder %v319_v13, %v327_v23  ;;  %394 = vrot.lane.b32.xlu1 %v383_v26, %s897_s30  ;;  %v374_v43 = vadd.f32 %v370_v36, %v366_v31  ;;  %390 = vrot.lane.b32.xlu0 %v381_v32, %s897_s30 }
  0x18   : > { %v330_v34 = vsel %vm328_vm3, 1.0, %v896_v1  ;;  %v331_v38 = vsel %vm329_vm4, 1.0, %v896_v1  ;;  %378 = vst.msk [vmem:[#allocation2 + $0x10] sm:$0xff] %vm307_vm0, %v373_v35  ;;  %v368_v44 = vmul.f32 %v360_v37, %v360_v37  ;;  %376 = vst.msk [vmem:[#allocation2] sm:$0xff] %vm307_vm0, %v371_v39 }
  0x19   : > { %v811_v41 = vpack.c.bf16 %v330_v34, %v330_v34  ;;  %v812_v42 = vpack.c.bf16 %v331_v38, %v331_v38  ;;  %379 = vst.msk [vmem:[#allocation2 + $0x18] sm:$0xff] %vm307_vm0, %v374_v43 }
  0x1a   : > { %v372_v45 = vadd.f32 %v368_v44, %v364_v40  ;;  %v355_v44 = vld [vmem:[%s296_s8] sm:$0xff] }
  0x1b   : > { %341 = vst.msk [vmem:[#allocation4] sm:$0xf] %vm340_vm2, %v811_v41  ;;  %342 = vst.msk [vmem:[#allocation4 + $0x4] sm:$0xf] %vm340_vm2, %v812_v42 }
  0x1c   : > { %377 = vst.msk [vmem:[#allocation2 + $0x8] sm:$0xff] %vm307_vm0, %v372_v45 }
  0x1f   : > { %v648_v33 = vld [vmem:[#allocation2] sm:$0xff]  ;;  %v650_v37 = vld [vmem:[#allocation2 + $0x10] sm:$0xff] }
  0x20   : > { %v652_v35 = vsel %vm307_vm0, %v648_v33, 0.0  ;;  %v655_v39 = vsel %vm307_vm0, %v650_v37, 0.0  ;;  %v651_v40 = vld [vmem:[#allocation2 + $0x18] sm:$0xff] }
  0x21   : > { %v657_v42 = vsel %vm307_vm0, %v651_v40, 0.0 }
  0x22   : > { %v871_v46 = vld [vmem:[#allocation4] sm:$0xff]  }
  0x23   : > { %828 = vmatprep.subr.bf16.mxu1 %v871_v46  ;;  %822 = vmatprep.subr.bf16.mxu0 %v871_v46  ;;  %v649_v34 = vld [vmem:[#allocation2 + $0x8] sm:$0xff] }
  0x24   : > { %829 = vmatpush3.bf16.msra.mxu1 %v871_v46  ;;  %823 = vmatpush3.bf16.msra.mxu0 %v871_v46  ;;  %v653_v36 = vsel %vm307_vm0, %v649_v34, 0.0 }
  0x25   : > { %834 = vmatprep.subr.bf16.mxu0 %v871_v46  ;;  %v654_v38 = vadd.f32 %v653_v36, %v652_v35 }
  0x27   : > { %v656_v41 = vadd.f32 %v655_v39, %v654_v38 }
  0x29   : > { %v658_v43 = vadd.f32 %v657_v42, %v656_v41 }
  0x85   : > { %v393_v47 = vpop.permute.xlu1 %392  ;;  %v389_v48 = vpop.permute.xlu0 %388 }
  0x86   : > { %v402_v50 = vmax.f32 %v382_v10, %v393_v47  ;;  %v400_v53 = vmax.f32 %v380_v16, %v389_v48  ;;  %v628_v48 = vld [vmem:[#allocation3] sm:$0xff] }
  0x89   : > { %v395_v49 = vpop.permute.xlu1 %394  ;;  %v391_v52 = vpop.permute.xlu0 %390 }
  0x8a   : > { %v403_v51 = vmax.f32 %v383_v26, %v395_v49  ;;  %v401_v54 = vmax.f32 %v381_v32, %v391_v52  ;;  %v357_v49 = vld [vmem:[%s296_s8 + $0x10] sm:$0xff] }
  0x8c   : > { %v405_v55 = vpack.c.bf16 %v403_v51, %v402_v50  ;;  %v404_v56 = vpack.c.bf16 %v401_v54, %v400_v53 }
  0x8e   : > { %v408_v57 = vunpack.c.l.bf16 %v405_v55  ;;  %v409_v58 = vunpack.c.h.bf16 %v405_v55  ;;  %v406_v59 = vunpack.c.l.bf16 %v404_v56  ;;  %v407_v60 = vunpack.c.h.bf16 %v404_v56  ;;  %830 = vmatprep.mubr.msk.bf16.mxu1 %vm434_vm5, %v404_v56 }
  0x8f   : > { %831 = vmatmul.mubr.msk.bf16.vlgmr.msra.gmra.mxu1 %vm434_vm5, %v405_v55 }
  0x90   : > { %v412_v61 = vsub.f32 %v402_v50, %v408_v57  ;;  %v413_v62 = vsub.f32 %v403_v51, %v409_v58  ;;  %v411_v63 = vsub.f32 %v401_v54, %v407_v60  ;;  %v410_v0 = vsub.f32 %v400_v53, %v406_v59  ;;  %v356_v51 = vld [vmem:[%s296_s8 + $0x8] sm:$0xff]  ;;  %v630_v59 = vld [vmem:[#allocation3 + $0x10] sm:$0xff] }
  0x91   : > { %v629_v60 = vld [vmem:[#allocation3 + $0x8] sm:$0xff] }
  0x92   : > { %v415_v2 = vpack.c.bf16 %v413_v62, %v412_v61  ;;  %v414_v3 = vpack.c.bf16 %v411_v63, %v410_v0 }
  0x94   : > { %v418_v4 = vunpack.c.l.bf16 %v415_v2  ;;  %v419_v5 = vunpack.c.h.bf16 %v415_v2  ;;  %v416_v6 = vunpack.c.l.bf16 %v414_v3  ;;  %v417_v7 = vunpack.c.h.bf16 %v414_v3  ;;  %824 = vmatprep.mubr.msk.bf16.mxu0 %vm434_vm5, %v414_v3 }
  0x95   : > { %825 = vmatmul.mubr.msk.bf16.vlgmr.msra.gmra.mxu0 %vm434_vm5, %v415_v2 }
  0x96   : > { %v420_v8 = vsub.f32 %v410_v0, %v416_v6  ;;  %835 = vmatpush3.bf16.msra.mxu0 %v871_v46  ;;  %v421_v9 = vsub.f32 %v411_v63, %v417_v7  ;;  %v422_v10 = vsub.f32 %v412_v61, %v418_v4  ;;  %v423_v11 = vsub.f32 %v413_v62, %v419_v5  ;;  %v358_v61 = vld [vmem:[%s296_s8 + $0x18] sm:$0xff] }
  0x97   : > { %v631_v6 = vld [vmem:[#allocation3 + $0x18] sm:$0xff] }
  0x98   : > { %v424_v12 = vpack.c.bf16 %v421_v9, %v420_v8  ;;  %v425_v13 = vpack.c.bf16 %v423_v11, %v422_v10 }
  0x9a   : > { %836 = vmatprep.mubr.msk.bf16.mxu0 %vm434_vm5, %v424_v12 }
  0x9d   : > { %837 = vmatmul.mubr.msk.bf16.vlgmr.msra.gmra.mxu0 %vm434_vm5, %v425_v13 }
 0x14f   : > { %v832_v14 = vpop.f32.mrf.mxu1 }
 0x151   : > { %v530_v17 = vpop.f32.mrf.mxu1 }
 0x153   : > { %v833_v20 = vpop.f32.mrf.mxu1 }
 0x155   : > { %v826_v15 = vpop.f32.mrf.mxu0  ;;  %v533_v25 = vpop.f32.mrf.mxu1 }
 0x156   : > { %v539_v27 = vadd.f32 %v832_v14, %v826_v15 }
 0x157   : > { %v475_v16 = vpop.f32.mrf.mxu0 }
 0x158   : > { %v531_v22 = vadd.f32 %v530_v17, %v475_v16 }
 0x159   : > { %v827_v18 = vpop.f32.mrf.mxu0 }
 0x15a   : > { %v542_v31 = vadd.f32 %v833_v20, %v827_v18 }
 0x15b   : > { %v478_v19 = vpop.f32.mrf.mxu0 }
 0x15c   : > { %v534_v28 = vadd.f32 %v533_v25, %v478_v19 }
 0x15d   : > { %v838_v21 = vpop.f32.mrf.mxu0 }
 0x15e   : > { %v602_v30 = vadd.f32 %v838_v21, %v539_v27 }
 0x15f   : > { %v585_v23 = vpop.f32.mrf.mxu0 }
 0x160   : > { %v600_v24 = vadd.f32 %v585_v23, %v531_v22 }
 0x161   : > { %v839_v26 = vpop.f32.mrf.mxu0 }
 0x162   : > { %608 = vrot.lane.b32.xlu0 %v600_v24, %s898_s5  ;;  %v603_v32 = vadd.f32 %v839_v26, %v542_v31 }
 0x163   : > { %v588_v29 = vpop.f32.mrf.mxu0 }
 0x164   : > { %v601_v1 = vadd.f32 %v588_v29, %v534_v28 }
 0x166   : > { %612 = vrot.lane.b32.xlu0 %v602_v30, %s898_s5  ;;  %610 = vrot.lane.b32.xlu1 %v601_v1, %s898_s5 }
 0x16a   : > { %614 = vrot.lane.b32.xlu1 %v603_v32, %s898_s5 }
 0x185   : > { %659 = vadd.xlane.f32.xlu0 %v658_v43 }
 0x1d4   : > { %v609_v45 = vpop.permute.xlu0 %608 }
 0x1d5   : > { %v620_v46 = vmax.f32 %v600_v24, %v609_v45 }
 0x1d7   : > { %v624_v47 = vsub.f32 %v355_v44, %v620_v46 }
 0x1d8   : > { %v613_v50 = vpop.permute.xlu0 %612  ;;  %v611_v52 = vpop.permute.xlu1 %610 }
 0x1d9   : > { %v632_v53 = vmul.f32 %v624_v47, %v624_v47  ;;  %v622_v54 = vmax.f32 %v602_v30, %v613_v50  ;;  %v621_v55 = vmax.f32 %v601_v1, %v611_v52 }
 0x1db   : > { %v636_v56 = vadd.f32 %v632_v53, %v628_v48  ;;  %v626_v57 = vsub.f32 %v357_v49, %v622_v54  ;;  %v625_v58 = vsub.f32 %v356_v51, %v621_v55 }
 0x1dc   : > { %v615_v62 = vpop.permute.xlu1 %614 }
 0x1dd   : > { %641 = vst.msk [vmem:[#allocation3] sm:$0xff] %vm312_vm6, %v636_v56  ;;  %v634_v63 = vmul.f32 %v626_v57, %v626_v57  ;;  %v633_v0 = vmul.f32 %v625_v58, %v625_v58  ;;  %v623_v2 = vmax.f32 %v603_v32, %v615_v62 }
 0x1df   : > { %v638_v3 = vadd.f32 %v634_v63, %v630_v59  ;;  %v637_v4 = vadd.f32 %v633_v0, %v629_v60  ;;  %v627_v5 = vsub.f32 %v358_v61, %v623_v2 }
 0x1e1   : > { %643 = vst.msk [vmem:[#allocation3 + $0x10] sm:$0xff] %vm312_vm6, %v638_v3  ;;  %642 = vst.msk [vmem:[#allocation3 + $0x8] sm:$0xff] %vm312_vm6, %v637_v4  ;;  %v635_v7 = vmul.f32 %v627_v5, %v627_v5 }
 0x1e3   : > { %v639_v8 = vadd.f32 %v635_v7, %v631_v6 }
 0x1e4   : > { %v669_v9 = vld [vmem:[#allocation3] sm:$0xff] }
 0x1e5   : > { %644 = vst.msk [vmem:[#allocation3 + $0x18] sm:$0xff] %vm312_vm6, %v639_v8  ;;  %v673_v12 = vsel %vm312_vm6, %v669_v9, 0.0 }
 0x1e8   : > { %v670_v10 = vld [vmem:[#allocation3 + $0x8] sm:$0xff]  ;;  %v671_v11 = vld [vmem:[#allocation3 + $0x10] sm:$0xff] }
 0x1e9   : > { %v674_v13 = vsel %vm312_vm6, %v670_v10, 0.0  ;;  %v676_v15 = vsel %vm312_vm6, %v671_v11, 0.0 }
 0x1ea   : > { %v675_v14 = vadd.f32 %v674_v13, %v673_v12 }
 0x1ec   : > { %v672_v16 = vld [vmem:[#allocation3 + $0x18] sm:$0xff]  ;;  %v677_v17 = vadd.f32 %v676_v15, %v675_v14 }
 0x1ed   : > { %v678_v18 = vsel %vm312_vm6, %v672_v16, 0.0 }
 0x1ee   : > { %v679_v19 = vadd.f32 %v678_v18, %v677_v17 }
 0x1f0   : > { %680 = vadd.xlane.f32.xlu1 %v679_v19 }
 0x20e   : > { %v660_v20 = vpop.xlane.xlu0 %659 }
 0x20f   : > { %v661_v21 = vrot.slane %v660_v20, 4 }
 0x211   : > { %v662_v22 = vadd.f32 %v661_v21, %v660_v20 }
 0x213   : > { %v663_v23 = vrot.slane %v662_v22, 2 }
 0x215   : > { %v664_v24 = vadd.f32 %v663_v23, %v662_v22 }
 0x217   : > { %v665_v25 = vrot.slane %v664_v24, 1 }
 0x219   : > { %v666_v26 = vadd.f32 %v665_v25, %v664_v24 }
 0x21b   : > { %840 = vpush %v666_v26 }
 0x24c   : > { %s841_s9 = spop %840 }
 0x24d   : > { %v668_v33 = vstv %s841_s9 }
 0x24e   : > { %v690_v35 = vmul.f32 0.00048828125, %v668_v33 }
 0x279   : > { %v681_v27 = vpop.xlane.xlu1 %680 }
 0x27a   : > { %v682_v28 = vrot.slane %v681_v27, 4 }
 0x27c   : > { %v683_v29 = vadd.f32 %v682_v28, %v681_v27 }
 0x27e   : > { %v684_v30 = vrot.slane %v683_v29, 2 }
 0x280   : > { %v685_v1 = vadd.f32 %v684_v30, %v683_v29 }
 0x282   : > { %v686_v31 = vrot.slane %v685_v1, 1 }
 0x284   : > { %v687_v32 = vadd.f32 %v686_v31, %v685_v1 }
 0x286   : > { %842 = vpush %v687_v32 }
 0x2b7   : > { %s843_s10 = spop %842 }
 0x2b8   : > { %v689_v34 = vstv %s843_s10 }
 0x2b9   : > { %v691_v36 = vmul.f32 0.001953125, %v689_v34 }
 0x2bb   : > { %v692_v37 = vadd.f32 %v691_v36, %v690_v35 }
 0x2bd   : > { %694 = vst.msk [vmem:[%s301_s13] sm:$0x1] %vm693_vm7, %v692_v37 }
 0x2be PF: > { %s14_s17 = sadd.s32 1, %s894_s17   ;;  %s1047_s15 = smov %s890_s16 }
 0x2bf   : > { %p11_p6 = scmp.ge.s32.totalorder %s14_s17, 4   ;;  %s1048_s16 = smov %s1050_s18 }
 0x2c1   :  { %13 = sbr.rel (!%p11_p6) target bundleno = 2 (0x2), region = 83 }

</bundles_post_ra>
